<compile_context>
chip_gen: v5e
topology: v5e:2x2
jax: 0.10.0
libtpu: 0.0.40
codegen_flags: <defaults>
</compile_context>

<pallas_src>
import functools
import math

import jax
import jax.numpy as jnp
from jax.experimental import pallas as pl
from jax.experimental.pallas import tpu as pltpu


def _round_up(x, m):
    return (x + m - 1) // m * m


def _tensorcores_per_chip():
    # Only used to decide whether to split one big M tile so both TensorCores
    # get work on megacore-style chips; safe fallback is 1.
    try:
        kind = jax.devices()[0].device_kind.lower()
    except Exception:
        return 1
    return 2 if any(t in kind for t in ("v4", "v5p", "v7")) else 1


# ----------------------------------------------------------------------------
# Kernel: one (bm, d_eff) activation tile  x  one (d_eff, tn) weight col tile.
# ----------------------------------------------------------------------------
def _gate_kernel(h1_ref, h2_ref, w1_ref, w2_ref, b_ref, o_ref, *,
                 tn, full_width, precision):
    h1 = h1_ref[...]                                             # (bm, d_eff)
    h2 = h2_ref[...]                                             # (bm, d_eff)
    logits = (jnp.dot(h1, w1_ref[...], precision=precision,
                      preferred_element_type=jnp.float32)
              + jnp.dot(h2, w2_ref[...], precision=precision,
                        preferred_element_type=jnp.float32)
              + b_ref[...].astype(jnp.float32))                  # (bm, tn)
    g = jax.nn.sigmoid(logits)                                   # EUP logistic

    if full_width:
        h1c, h2c = h1, h2
    else:
        # Blend needs the same output-column window of h1/h2 (in_sz == out_sz).
        col = pl.multiple_of(pl.program_id(1) * tn, 128)
        h1c = h1_ref[:, pl.ds(col, tn)]
        h2c = h2_ref[:, pl.ds(col, tn)]
    h1f = h1c.astype(jnp.float32)
    h2f = h2c.astype(jnp.float32)
    o_ref[...] = (h2f + g * (h1f - h2f)).astype(o_ref.dtype)


# ----------------------------------------------------------------------------
# Wrapper
# ----------------------------------------------------------------------------
def gate_forward(h1, h2, w1, w2, b, *, block_m=512):
    """Gate forward.  h1, h2: (..., D);  w1, w2: (D, D);  b: (D,)."""
    in_sz, out_sz = w1.shape
    assert in_sz == out_sz, "Gate blend (G*h1 + (1-G)*h2) requires in_sz == out_sz"
    assert h1.shape == h2.shape and h1.shape[-1] == in_sz

    lead_shape = h1.shape[:-1]
    m = int(math.prod(lead_shape)) if lead_shape else 1
    d = in_sz

    compute_dtype = jnp.dtype(h1.dtype)
    itemsize = compute_dtype.itemsize
    precision = (jax.lax.Precision.HIGHEST
                 if compute_dtype == jnp.dtype(jnp.float32)
                 else jax.lax.Precision.DEFAULT)

    # Lane-dense last dim: pad only when D is not already a multiple of 128.
    d_eff = d if d % 128 == 0 else _round_up(d, 128)

    h1m = h1.reshape(m, d)
    h2m = h2.reshape(m, d)
    if h2m.dtype != compute_dtype:
        h2m = h2m.astype(compute_dtype)
    w1c = w1 if jnp.dtype(w1.dtype) == compute_dtype else w1.astype(compute_dtype)
    w2c = w2 if jnp.dtype(w2.dtype) == compute_dtype else w2.astype(compute_dtype)
    bc = b if jnp.dtype(b.dtype) == compute_dtype else b.astype(compute_dtype)
    bc = bc.reshape(1, d)

    if d_eff != d:
        pc = d_eff - d
        h1m = jnp.pad(h1m, ((0, 0), (0, pc)))
        h2m = jnp.pad(h2m, ((0, 0), (0, pc)))
        w1c = jnp.pad(w1c, ((0, pc), (0, pc)))
        w2c = jnp.pad(w2c, ((0, pc), (0, pc)))
        bc = jnp.pad(bc, ((0, 0), (0, pc)))

    # ---- Tile sizes --------------------------------------------------------
    # Keep weights fully resident for moderate D; column-tile them once the
    # (D, D) weights get big (keeps v7x's 64 MiB VMEM happy).
    tn = d_eff
    if d_eff > 1024 and d_eff % 512 == 0:
        tn = 512

    bm = _round_up(min(block_m, _round_up(m, 8)), 8)

    # On 2-TC chips keep >= 2 grid steps over M (never below 256 rows);
    # on 1-TC chips a single big tile is strictly better.
    if _tensorcores_per_chip() >= 2 and pl.cdiv(m, bm) < 2 and bm >= 512:
        bm = max(256, _round_up(bm // 2, 8))

    # VMEM budget (conservative vs. v7x 64 MiB physical): shrink bm if the
    # double-buffered tiles would not fit.
    def vmem_need(bm_, tn_):
        act = bm_ * d_eff * itemsize           # h1 / h2 tiles
        out = bm_ * tn_ * itemsize
        wgt = d_eff * tn_ * itemsize           # W1 / W2 tiles
        bia = max(tn_ * itemsize, 4096)
        return 2 * (2 * act + out + 2 * wgt + bia)   # x2: double buffering

    budget = 48 << 20
    while vmem_need(bm, tn) > budget and bm > 256:
        new_bm = max(256, _round_up(bm // 2, 8))
        if new_bm == bm:
            break
        bm = new_bm

    grid_m = pl.cdiv(m, bm)
    grid_n = d_eff // tn

    vmem_limit = int(vmem_need(bm, tn) * 1.4) + (2 << 20)
    vmem_limit = min(max(vmem_limit, 32 << 20), 128 << 20)

    kernel = functools.partial(_gate_kernel, tn=tn,
                               full_width=(grid_n == 1),
                               precision=precision)

    act_spec = pl.BlockSpec((bm, d_eff), lambda i, j: (i, 0))
    w_spec = pl.BlockSpec((d_eff, tn), lambda i, j: (0, j))
    b_spec = pl.BlockSpec((1, tn), lambda i, j: (0, j))
    out_spec = pl.BlockSpec((bm, tn), lambda i, j: (i, j))

    out = pl.pallas_call(
        kernel,
        out_shape=jax.ShapeDtypeStruct((m, d_eff), compute_dtype),
        grid=(grid_m, grid_n),
        in_specs=[act_spec, act_spec, w_spec, w_spec, b_spec],
        out_specs=out_spec,
        compiler_params=pltpu.CompilerParams(
            dimension_semantics=("parallel", "parallel"),
            vmem_limit_bytes=vmem_limit),
    )(h1m, h2m, w1c, w2c, bc)

    if d_eff != d:
        out = out[:, :d]
    return out.reshape(*lead_shape, out_sz)


# ----------------------------------------------------------------------------
# Deterministic example (shapes implied by the module: in_sz == out_sz == D)
# ----------------------------------------------------------------------------
if __name__ == "__main__":
    B, S, D = 2, 8, 32

    key = jax.random.PRNGKey(0)
    k1, k2, kw1, kw2, kb = jax.random.split(key, 5)
    h1 = jax.random.normal(k1, (B, S, D), jnp.float32)
    h2 = jax.random.normal(k2, (B, S, D), jnp.float32)

    # kaiming_uniform_(a=sqrt(5)) on a 2-D (in, out) tensor reduces to
    # uniform(-1/sqrt(fan_in), 1/sqrt(fan_in)); bias likewise.
    bound = 1.0 / math.sqrt(D)
    w1 = jax.random.uniform(kw1, (D, D), jnp.float32, -bound, bound)
    w2 = jax.random.uniform(kw2, (D, D), jnp.float32, -bound, bound)
    b = jax.random.uniform(kb, (D,), jnp.float32, -bound, bound)

    fwd = jax.jit(gate_forward)
    z = fwd(h1, h2, w1, w2, b)
    jax.block_until_ready(z)

    # Pure-JAX reference check.
    dot = lambda a, w: jnp.dot(a, w, precision=jax.lax.Precision.HIGHEST)
    g_ref = jax.nn.sigmoid(dot(h1, w1) + dot(h2, w2) + b)
    z_ref = g_ref * h1 + (1.0 - g_ref) * h2
    assert z.shape == (B, S, D)
    assert z.dtype == h1.dtype
    assert jnp.allclose(z, z_ref, atol=1e-3, rtol=1e-3)

    print("KERNEL_OK")
</pallas_src>

<mosaic_0001>
module attributes {stable_mosaic.version = 11 : i64} {
  func.func @_gate_kernel(%arg0: i32, %arg1: i32, %arg2: memref<16x128xf32, #tpu.memory_space<vmem>>, %arg3: memref<16x128xf32, #tpu.memory_space<vmem>>, %arg4: memref<128x128xf32, #tpu.memory_space<vmem>>, %arg5: memref<128x128xf32, #tpu.memory_space<vmem>>, %arg6: memref<1x128xf32, #tpu.memory_space<vmem>>, %arg7: memref<16x128xf32, #tpu.memory_space<vmem>>) attributes {dimension_semantics = [#tpu.dimension_semantics<parallel>, #tpu.dimension_semantics<parallel>], iteration_bounds = array<i64: 1, 1>, scalar_prefetch = 0 : i64, scratch_operands = 0 : i64, tpu.core_type = #tpu.core_type<tc>, window_params = [{transform_indices = @transform_0, window_bounds = array<i64: 16, 128>}, {transform_indices = @transform_1, window_bounds = array<i64: 16, 128>}, {transform_indices = @transform_2, window_bounds = array<i64: 128, 128>}, {transform_indices = @transform_3, window_bounds = array<i64: 128, 128>}, {transform_indices = @transform_4, window_bounds = array<i64: 1, 128>}, {transform_indices = @transform_5, window_bounds = array<i64: 16, 128>}]} {
    %c0 = arith.constant 0 : index
    %c0_0 = arith.constant 0 : index
    %0 = vector.load %arg2[%c0, %c0_0] : memref<16x128xf32, #tpu.memory_space<vmem>>, vector<16x128xf32>
    %c0_1 = arith.constant 0 : index
    %c0_2 = arith.constant 0 : index
    %1 = vector.load %arg3[%c0_1, %c0_2] : memref<16x128xf32, #tpu.memory_space<vmem>>, vector<16x128xf32>
    %c0_3 = arith.constant 0 : index
    %c0_4 = arith.constant 0 : index
    %2 = vector.load %arg4[%c0_3, %c0_4] : memref<128x128xf32, #tpu.memory_space<vmem>>, vector<128x128xf32>
    %cst = arith.constant dense<0.000000e+00> : vector<16x128xf32>
    %3 = tpu.matmul %0, %2, %cst {dimension_numbers = #tpu.dot_dimension_numbers<[1], [0], [0], [1], [0, 0, 1, 1], [], []>, precision = #tpu.contract_precision<fp32>} : vector<16x128xf32>, vector<128x128xf32>, vector<16x128xf32> -> vector<16x128xf32>
    %c0_5 = arith.constant 0 : index
    %c0_6 = arith.constant 0 : index
    %4 = vector.load %arg5[%c0_5, %c0_6] : memref<128x128xf32, #tpu.memory_space<vmem>>, vector<128x128xf32>
    %cst_7 = arith.constant dense<0.000000e+00> : vector<16x128xf32>
    %5 = tpu.matmul %1, %4, %cst_7 {dimension_numbers = #tpu.dot_dimension_numbers<[1], [0], [0], [1], [0, 0, 1, 1], [], []>, precision = #tpu.contract_precision<fp32>} : vector<16x128xf32>, vector<128x128xf32>, vector<16x128xf32> -> vector<16x128xf32>
    %6 = arith.addf %3, %5 : vector<16x128xf32>
    %c0_8 = arith.constant 0 : index
    %c0_9 = arith.constant 0 : index
    %7 = vector.load %arg6[%c0_8, %c0_9] : memref<1x128xf32, #tpu.memory_space<vmem>>, vector<1x128xf32>
    %8 = vector.broadcast %7 : vector<1x128xf32> to vector<16x128xf32>
    %9 = arith.addf %6, %8 : vector<16x128xf32>
    %10 = arith.negf %9 : vector<16x128xf32>
    %11 = math.exp %10 : vector<16x128xf32>
    %cst_10 = arith.constant 1.000000e+00 : f32
    %12 = vector.broadcast %cst_10 : f32 to vector<16x128xf32>
    %13 = arith.addf %12, %11 : vector<16x128xf32>
    %14 = arith.divf %12, %13 : vector<16x128xf32>
    %15 = arith.subf %0, %1 : vector<16x128xf32>
    %16 = arith.mulf %14, %15 : vector<16x128xf32>
    %17 = arith.addf %1, %16 : vector<16x128xf32>
    %c0_11 = arith.constant 0 : index
    %c0_12 = arith.constant 0 : index
    %18 = vector.load %arg7[%c0_11, %c0_12] : memref<16x128xf32, #tpu.memory_space<vmem>>, vector<16x128xf32>
    tpu.vector_store %arg7[%c0_11, %c0_12], %17 {strides = array<i32>} : memref<16x128xf32, #tpu.memory_space<vmem>>, vector<16x128xf32>,
    return
  }
  func.func @transform_0(%arg0: i32, %arg1: i32) -> (i32, i32) {
    %c0_i32 = arith.constant 0 : i32
    %c0_i32_0 = arith.constant 0 : i32
    return %arg0, %c0_i32 : i32, i32
  }
  func.func @transform_1(%arg0: i32, %arg1: i32) -> (i32, i32) {
    %c0_i32 = arith.constant 0 : i32
    %c0_i32_0 = arith.constant 0 : i32
    return %arg0, %c0_i32 : i32, i32
  }
  func.func @transform_2(%arg0: i32, %arg1: i32) -> (i32, i32) {
    %c0_i32 = arith.constant 0 : i32
    %c0_i32_0 = arith.constant 0 : i32
    return %c0_i32, %arg1 : i32, i32
  }
  func.func @transform_3(%arg0: i32, %arg1: i32) -> (i32, i32) {
    %c0_i32 = arith.constant 0 : i32
    %c0_i32_0 = arith.constant 0 : i32
    return %c0_i32, %arg1 : i32, i32
  }
  func.func @transform_4(%arg0: i32, %arg1: i32) -> (i32, i32) {
    %c0_i32 = arith.constant 0 : i32
    %c0_i32_0 = arith.constant 0 : i32
    return %c0_i32, %arg1 : i32, i32
  }
  func.func @transform_5(%arg0: i32, %arg1: i32) -> (i32, i32) {
    %c0_i32 = arith.constant 0 : i32
    return %arg0, %arg1 : i32, i32
  }
}

</mosaic_0001>

<bundles_post_ra>
// kernel: gate_forward.1
= control target key start
LH: loop header
LB: loop body
LE: loop exit
PB: predicated region body
PF: predicated region fallthrough
CT: control target
= control target key end

     0   :  { %s1563_s3 = inlined_call_operand.vmem [shape: f32[128,128], index: 3, kind: input, shape index: {}]   ;;  %s1564_s2 = inlined_call_operand.vmem [shape: f32[128,128], index: 2, kind: input, shape index: {}]   ;;  %s1565_s1 = inlined_call_operand.vmem [shape: f32[16,128], index: 1, kind: input, shape index: {}]   ;;  %s1566_s0 = inlined_call_operand.vmem [shape: f32[16,128], index: 0, kind: input, shape index: {}]   ;;  %s1567_s4 = inlined_call_operand.vmem [shape: f32[1,128], index: 4, kind: input, shape index: {}]   ;;  %s1568_s5 = inlined_call_operand.vmem [shape: f32[16,128], index: 5, kind: output, shape index: {}]  }
   0x1   :  { %v55_v0 = vld [vmem:[%s1563_s3 + $0x78] sm:$0xff]  ;;  %v54_v1 = vld [vmem:[%s1563_s3 + $0x70] sm:$0xff]  ;;  %v53_v2 = vld [vmem:[%s1563_s3 + $0x68] sm:$0xff] }
   0x2   :  { %v906_v3 = vand.u32 4294901760, %v55_v0  ;;  %v908_v4 = vand.u32 4294901760, %v54_v1  ;;  %v910_v5 = vand.u32 4294901760, %v53_v2  ;;  %v52_v6 = vld [vmem:[%s1563_s3 + $0x60] sm:$0xff]  ;;  %v51_v7 = vld [vmem:[%s1563_s3 + $0x58] sm:$0xff]  ;;  %v50_v8 = vld [vmem:[%s1563_s3 + $0x50] sm:$0xff] }
   0x3   :  { %v921_v9 = vand.u32 4294901760, %v52_v6  ;;  %v923_v10 = vand.u32 4294901760, %v51_v7  ;;  %v925_v11 = vand.u32 4294901760, %v50_v8  ;;  %v49_v12 = vld [vmem:[%s1563_s3 + $0x48] sm:$0xff]  ;;  %v48_v13 = vld [vmem:[%s1563_s3 + $0x40] sm:$0xff]  ;;  %v47_v18 = vld [vmem:[%s1563_s3 + $0x38] sm:$0xff] }
   0x4   :  { %57 = vmatpush.msra.mxu0 %v906_v3  ;;  %v935_v14 = vsub.f32 %v55_v0, %v906_v3  ;;  %v938_v15 = vsub.f32 %v54_v1, %v908_v4  ;;  %270 = vmatpush.msra.mxu3 %v906_v3  ;;  %v942_v16 = vsub.f32 %v53_v2, %v910_v5  ;;  %v944_v17 = vand.u32 4294901760, %v49_v12  ;;  %v46_v26 = vld [vmem:[%s1563_s3 + $0x30] sm:$0xff]  ;;  %v45_v36 = vld [vmem:[%s1563_s3 + $0x28] sm:$0xff]  ;;  %v44_v42 = vld [vmem:[%s1563_s3 + $0x20] sm:$0xff] }
   0x5   :  { %v950_v19 = vsub.f32 %v52_v6, %v921_v9  ;;  %v953_v20 = vsub.f32 %v51_v7, %v923_v10  ;;  %v956_v21 = vsub.f32 %v50_v8, %v925_v11  ;;  %v963_v25 = vand.u32 4294901760, %v48_v13  ;;  %v43_v48 = vld [vmem:[%s1563_s3 + $0x18] sm:$0xff]  ;;  %v42_v54 = vld [vmem:[%s1563_s3 + $0x10] sm:$0xff]  ;;  %v41_v61 = vld [vmem:[%s1563_s3 + $0x8] sm:$0xff] }
   0x6   :  { %59 = vmatpush.msra.mxu0 %v908_v4  ;;  %212 = vmatpush.msra.mxu2 %v935_v14  ;;  %v107_v22 = vand.u32 4294901760, %v935_v14  ;;  %v113_v23 = vand.u32 4294901760, %v938_v15  ;;  %v1582_v24 = vand.u32 4294901760, %v942_v16  ;;  %v970_v28 = vand.u32 4294901760, %v47_v18  ;;  %v39_v59 = vld [vmem:[%s1564_s2 + $0x78] sm:$0xff]  ;;  %v40_v2 = vld [vmem:[%s1563_s3] sm:$0xff] }
   0x7   :  { %272 = vmatpush.msra.mxu3 %v908_v4  ;;  %v1581_v27 = vand.u32 4294901760, %v950_v19  ;;  %v973_v29 = vsub.f32 %v49_v12, %v944_v17  ;;  %v1578_v33 = vand.u32 4294901760, %v953_v20  ;;  %v988_v34 = vand.u32 4294901760, %v46_v26  ;;  %v38_v6 = vld [vmem:[%s1564_s2 + $0x70] sm:$0xff] }
   0x8   :  { %61 = vmatpush.msra.mxu0 %v910_v5  ;;  %215 = vmatpush.msra.mxu2 %v938_v15  ;;  %v108_v30 = vsub.f32 %v935_v14, %v107_v22  ;;  %v114_v31 = vsub.f32 %v938_v15, %v113_v23  ;;  %v120_v32 = vsub.f32 %v942_v16, %v1582_v24  ;;  %v1577_v35 = vand.u32 4294901760, %v956_v21 }
   0x9   :  { %274 = vmatpush.msra.mxu3 %v910_v5  ;;  %v126_v39 = vsub.f32 %v950_v19, %v1581_v27  ;;  %v1000_v40 = vsub.f32 %v48_v13, %v963_v25  ;;  %v1575_v41 = vand.u32 4294901760, %v973_v29  ;;  %v132_v44 = vsub.f32 %v953_v20, %v1578_v33 }
   0xa   :  { %63 = vmatpush.msra.mxu0 %v921_v9  ;;  %v109_v37 = vand.u32 4294901760, %v108_v30  ;;  %218 = vmatpush.msra.mxu2 %v942_v16  ;;  %v115_v38 = vand.u32 4294901760, %v114_v31  ;;  %v121_v43 = vand.u32 4294901760, %v120_v32  ;;  %v1011_v45 = vand.u32 4294901760, %v45_v36  ;;  %v37_v30 = vld [vmem:[%s1564_s2 + $0x68] sm:$0xff] }
   0xb   :  { %276 = vmatpush.msra.mxu3 %v921_v9  ;;  %v1014_v46 = vsub.f32 %v47_v18, %v970_v28  ;;  %v138_v47 = vsub.f32 %v956_v21, %v1577_v35  ;;  %v127_v49 = vand.u32 4294901760, %v126_v39  ;;  %v1025_v50 = vand.u32 4294901760, %v44_v42 }
   0xc   :  { %65 = vmatpush.msra.mxu0 %v923_v10  ;;  %110 = vmatpush.msra.mxu1 %v109_v37  ;;  %v1574_v51 = vand.u32 4294901760, %v1000_v40  ;;  %v1029_v52 = vsub.f32 %v46_v26, %v988_v34  ;;  %v144_v53 = vsub.f32 %v973_v29, %v1575_v41  ;;  %v133_v55 = vand.u32 4294901760, %v132_v44  ;;  %v36_v44 = vld [vmem:[%s1564_s2 + $0x60] sm:$0xff] }
   0xd   :  { %221 = vmatpush.msra.mxu2 %v950_v19  ;;  %278 = vmatpush.msra.mxu3 %v923_v10  ;;  %v1040_v56 = vand.u32 4294901760, %v43_v48  ;;  %v1573_v57 = vand.u32 4294901760, %v1014_v46  ;;  %v1044_v58 = vsub.f32 %v45_v36, %v1011_v45  ;;  %v139_v60 = vand.u32 4294901760, %v138_v47 }
   0xe   :  { %67 = vmatpush.msra.mxu0 %v925_v11  ;;  %116 = vmatpush.msra.mxu1 %v115_v38  ;;  %v150_v62 = vsub.f32 %v1000_v40, %v1574_v51  ;;  %v1058_v63 = vand.u32 4294901760, %v42_v54  ;;  %v1571_v0 = vand.u32 4294901760, %v1029_v52  ;;  %v1062_v1 = vsub.f32 %v44_v42, %v1025_v50 }
   0xf   :  { %224 = vmatpush.msra.mxu2 %v953_v20  ;;  %280 = vmatpush.msra.mxu3 %v925_v11  ;;  %v145_v7 = vand.u32 4294901760, %v144_v53  ;;  %v1072_v8 = vand.u32 4294901760, %v39_v59  ;;  %v156_v12 = vsub.f32 %v1014_v46, %v1573_v57  ;;  %v1078_v13 = vand.u32 4294901760, %v41_v61 }
  0x10   :  { %69 = vmatpush.msra.mxu0 %v944_v17  ;;  %122 = vmatpush.msra.mxu1 %v121_v43  ;;  %v1570_v18 = vand.u32 4294901760, %v1044_v58  ;;  %v1082_v26 = vsub.f32 %v43_v48, %v1040_v56  ;;  %v1089_v31 = vand.u32 4294901760, %v40_v2  ;;  %v1091_v32 = vand.u32 4294901760, %v38_v6 }
  0x11   :  { %227 = vmatpush.msra.mxu2 %v956_v21  ;;  %282 = vmatpush.msra.mxu3 %v944_v17  ;;  %v151_v36 = vand.u32 4294901760, %v150_v62  ;;  %v162_v37 = vsub.f32 %v1029_v52, %v1571_v0  ;;  %v1569_v38 = vand.u32 4294901760, %v1062_v1  ;;  %v1099_v39 = vsub.f32 %v42_v54, %v1058_v63 }
  0x12   :  { %71 = vmatpush.msra.mxu0 %v963_v25  ;;  %128 = vmatpush.msra.mxu1 %v127_v49  ;;  %v1104_v42 = vsub.f32 %v39_v59, %v1072_v8  ;;  %v1106_v43 = vand.u32 4294901760, %v37_v30  ;;  %v157_v47 = vand.u32 4294901760, %v156_v12  ;;  %v168_v48 = vsub.f32 %v1044_v58, %v1570_v18  ;;  %v35_v59 = vld [vmem:[%s1564_s2 + $0x58] sm:$0xff]  ;;  %v34_v12 = vld [vmem:[%s1564_s2 + $0x50] sm:$0xff] }
  0x13   :  { %230 = vmatpush.msra.mxu2 %v973_v29  ;;  %284 = vmatpush.msra.mxu3 %v963_v25  ;;  %v1572_v49 = vand.u32 4294901760, %v1082_v26  ;;  %v1117_v53 = vsub.f32 %v41_v61, %v1078_v13  ;;  %v1122_v54 = vsub.f32 %v40_v2, %v1089_v31  ;;  %v174_v61 = vsub.f32 %v1062_v1, %v1569_v38 }
  0x14   :  { %73 = vmatpush.msra.mxu0 %v970_v28  ;;  %134 = vmatpush.msra.mxu1 %v133_v55  ;;  %v1125_v55 = vsub.f32 %v38_v6, %v1091_v32  ;;  %v1576_v62 = vand.u32 4294901760, %v1099_v39  ;;  %v1579_v2 = vand.u32 4294901760, %v1104_v42  ;;  %v1141_v6 = vsub.f32 %v37_v30, %v1106_v43 }
  0x15   :  { %233 = vmatpush.msra.mxu2 %v1000_v40  ;;  %286 = vmatpush.msra.mxu3 %v970_v28  ;;  %v1580_v38 = vand.u32 4294901760, %v1117_v53  ;;  %v1151_v18 = vand.u32 4294901760, %v35_v59  ;;  %v1584_v30 = vand.u32 4294901760, %v1122_v54  ;;  %v1167_v51 = vand.u32 4294901760, %v34_v12 }
  0x16   :  { %75 = vmatpush.msra.mxu0 %v988_v34  ;;  %140 = vmatpush.msra.mxu1 %v139_v60  ;;  %v163_v60 = vand.u32 4294901760, %v162_v37  ;;  %v180_v37 = vsub.f32 %v1082_v26, %v1572_v49  ;;  %v1583_v0 = vand.u32 4294901760, %v1125_v55  ;;  %v186_v49 = vsub.f32 %v1099_v39, %v1576_v62 }
  0x17   :  { %236 = vmatpush.msra.mxu2 %v1014_v46  ;;  %288 = vmatpush.msra.mxu3 %v988_v34  ;;  %v480_v41 = vsub.f32 %v1104_v42, %v1579_v2  ;;  %v192_v62 = vsub.f32 %v1117_v53, %v1580_v38  ;;  %v1183_v35 = vsub.f32 %v35_v59, %v1151_v18 }
  0x18   :  { %77 = vmatpush.msra.mxu0 %v1011_v45  ;;  %146 = vmatpush.msra.mxu1 %v145_v7  ;;  %v1135_v7 = vand.u32 4294901760, %v36_v44  ;;  %v198_v2 = vsub.f32 %v1122_v54, %v1584_v30  ;;  %v187_v59 = vand.u32 4294901760, %v186_v49  ;;  %v1201_v27 = vsub.f32 %v34_v12, %v1167_v51  ;;  %v30_v49 = vld [vmem:[%s1564_s2 + $0x30] sm:$0xff] }
  0x19   :  { %239 = vmatpush.msra.mxu2 %v1029_v52  ;;  %290 = vmatpush.msra.mxu3 %v1011_v45  ;;  %v1587_v12 = vand.u32 4294901760, %v1183_v35 }
  0x1a   :  { %79 = vmatpush.msra.mxu0 %v1025_v50  ;;  %152 = vmatpush.msra.mxu1 %v151_v36  ;;  %v169_v36 = vand.u32 4294901760, %v168_v48  ;;  %v175_v48 = vand.u32 4294901760, %v174_v61  ;;  %v1165_v57 = vsub.f32 %v36_v44, %v1135_v7  ;;  %v32_v61 = vld [vmem:[%s1564_s2 + $0x40] sm:$0xff]  ;;  %v181_v44 = vand.u32 4294901760, %v180_v37  ;;  %v31_v37 = vld [vmem:[%s1564_s2 + $0x38] sm:$0xff] }
  0x1b   :  { %242 = vmatpush.msra.mxu2 %v1044_v58  ;;  %292 = vmatpush.msra.mxu3 %v1025_v50  ;;  %v1203_v24 = vand.u32 4294901760, %v32_v61 }
  0x1c   :  { %81 = vmatpush.msra.mxu0 %v1040_v56  ;;  %158 = vmatpush.msra.mxu1 %v157_v47  ;;  %v33_v47 = vld [vmem:[%s1564_s2 + $0x48] sm:$0xff]  ;;  %v1586_v38 = vand.u32 4294901760, %v1165_v57 }
  0x1d   :  { %245 = vmatpush.msra.mxu2 %v1062_v1  ;;  %294 = vmatpush.msra.mxu3 %v1040_v56  ;;  %v1185_v33 = vand.u32 4294901760, %v33_v47  ;;  %v1235_v15 = vsub.f32 %v32_v61, %v1203_v24 }
  0x1e   :  { %83 = vmatpush.msra.mxu0 %v1058_v63  ;;  %164 = vmatpush.msra.mxu1 %v163_v60  ;;  %v1585_v60 = vand.u32 4294901760, %v1141_v6 }
  0x1f   :  { %248 = vmatpush.msra.mxu2 %v1082_v26  ;;  %296 = vmatpush.msra.mxu3 %v1058_v63  ;;  %v1217_v14 = vsub.f32 %v33_v47, %v1185_v33  ;;  %v498_v47 = vsub.f32 %v1165_v57, %v1586_v38  ;;  %v28_v38 = vld [vmem:[%s1564_s2 + $0x20] sm:$0xff] }
  0x20   :  { %85 = vmatpush.msra.mxu0 %v1078_v13  ;;  %170 = vmatpush.msra.mxu1 %v169_v36  ;;  %v486_v36 = vsub.f32 %v1125_v55, %v1583_v0  ;;  %v481_v0 = vand.u32 4294901760, %v480_v41  ;;  %v492_v30 = vsub.f32 %v1141_v6, %v1585_v60  ;;  %v199_v41 = vand.u32 4294901760, %v198_v2 }
  0x21   :  { %251 = vmatpush.msra.mxu2 %v1099_v39  ;;  %298 = vmatpush.msra.mxu3 %v1078_v13  ;;  %v1593_v2 = vand.u32 4294901760, %v942_v16  ;;  %v29_v16 = vld [vmem:[%s1564_s2 + $0x28] sm:$0xff] }
  0x22   :  { %87 = vmatpush.msra.mxu0 %v1089_v31  ;;  %176 = vmatpush.msra.mxu1 %v175_v48  ;;  %v193_v48 = vand.u32 4294901760, %v192_v62  ;;  %v487_v60 = vand.u32 4294901760, %v486_v36  ;;  %v1227_v62 = vld [vmem:[%s1565_s1] sm:$0xff]  ;;  %v493_v36 = vand.u32 4294901760, %v492_v30  ;;  %v499_v30 = vand.u32 4294901760, %v498_v47 }
  0x23   :  { %254 = vmatpush.msra.mxu2 %v1117_v53  ;;  %300 = vmatpush.msra.mxu3 %v1089_v31  ;;  %1592 = vst [vmem:[#allocation2_spill] sm:$0xff] %v1227_v62  ;;  %v1250_v61 = vand.u32 4294901760, %v1227_v62  ;;  %v1597_v47 = vand.u32 4294901760, %v1217_v14 }
  0x24   :  { %317 = vmatpush.msrb.mxu0 %v107_v22  ;;  %182 = vmatpush.msra.mxu1 %v181_v44  ;;  %v1219_v22 = vand.u32 4294901760, %v31_v37 }
  0x25   :  { %257 = vmatpush.msra.mxu2 %v1122_v54  ;;  %482 = vmatpush.msrb.mxu3 %v481_v0  ;;  %v1594_v0 = vand.u32 4294901760, %v950_v19  ;;  %v1596_v19 = vand.u32 4294901760, %v953_v20  ;;  %v1598_v20 = vand.u32 4294901760, %v956_v21 }
  0x26   :  { %321 = vmatpush.msrb.mxu0 %v113_v23  ;;  %188 = vmatpush.msra.mxu1 %v187_v59  ;;  %v1237_v23 = vand.u32 4294901760, %v30_v49  ;;  %v504_v59 = vsub.f32 %v1183_v35, %v1587_v12  ;;  %v1247_v44 = vsub.f32 %v31_v37, %v1219_v22 }
  0x27   :  { %429 = vmatpush.msrb.mxu2 %v1072_v8  ;;  %488 = vmatpush.msrb.mxu3 %v487_v60  ;;  %v1271_v60 = vand.u32 4294901760, %v29_v16 }
  0x28   :  { %325 = vmatpush.msrb.mxu0 %v1593_v2  ;;  %194 = vmatpush.msra.mxu1 %v193_v48  ;;  %v1595_v48 = vand.u32 4294901760, %v1201_v27  ;;  %v1588_v2 = vand.u32 4294901760, %v1235_v15  ;;  %v1263_v12 = vsub.f32 %v30_v49, %v1237_v23  ;;  %v516_v49 = vsub.f32 %v1217_v14, %v1597_v47 }
  0x29   :  { %431 = vmatpush.msrb.mxu2 %v1091_v32  ;;  %494 = vmatpush.msrb.mxu3 %v493_v36  ;;  %v1288_v36 = vand.u32 4294901760, %v28_v38  ;;  %v1299_v21 = vsub.f32 %v29_v16, %v1271_v60  ;;  %v1601_v16 = vand.u32 4294901760, %v1000_v40  ;;  %v25_v40 = vld [vmem:[%s1564_s2 + $0x8] sm:$0xff] }
  0x2a   :  { %329 = vmatpush.msrb.mxu0 %v1594_v0  ;;  %200 = vmatpush.msra.mxu1 %v199_v41  ;;  %v510_v37 = vsub.f32 %v1201_v27, %v1595_v48  ;;  %v505_v41 = vand.u32 4294901760, %v504_v59  ;;  %v1280_v48 = vsub.f32 %v1227_v62, %v1250_v61  ;;  %v1589_v47 = vand.u32 4294901760, %v1263_v12 }
  0x2b   :  { %433 = vmatpush.msrb.mxu2 %v1106_v43  ;;  %500 = vmatpush.msrb.mxu3 %v499_v30  ;;  %v1599_v0 = vand.u32 4294901760, %v973_v29  ;;  %v26_v30 = vld [vmem:[%s1564_s2 + $0x10] sm:$0xff] }
  0x2c   :  { %333 = vmatpush.msrb.mxu0 %v1596_v19  ;;  %388 = vmatpush.msrb.mxu1 %v906_v3  ;;  %v27_v3 = vld [vmem:[%s1564_s2 + $0x18] sm:$0xff]  ;;  %v511_v59 = vand.u32 4294901760, %v510_v37  ;;  %v522_v19 = vsub.f32 %v1235_v15, %v1588_v2  ;;  %v517_v37 = vand.u32 4294901760, %v516_v49  ;;  %v1320_v2 = vsub.f32 %v28_v38, %v1288_v36 }
  0x2d   :  { %435 = vmatpush.msrb.mxu2 %v1135_v7  ;;  %506 = vmatpush.msrb.mxu3 %v505_v41  ;;  %v534_v49 = vsub.f32 %v1263_v12, %v1589_v47 }
  0x2e   :  { %337 = vmatpush.msrb.mxu0 %v1598_v20  ;;  %390 = vmatpush.msrb.mxu1 %v908_v4  ;;  %v1301_v4 = vand.u32 4294901760, %v27_v3  ;;  %v1600_v20 = vand.u32 4294901760, %v1247_v44  ;;  %v523_v41 = vand.u32 4294901760, %v522_v19 }
  0x2f   :  { %437 = vmatpush.msrb.mxu2 %v1151_v18  ;;  %512 = vmatpush.msrb.mxu3 %v511_v59 }
  0x30   :  { %341 = vmatpush.msrb.mxu0 %v1599_v0  ;;  %392 = vmatpush.msrb.mxu1 %v910_v5  ;;  %v528_v29 = vsub.f32 %v1247_v44, %v1600_v20  ;;  %v90_v0 = vand.u32 4294901760, %v1280_v48  ;;  %v1314_v5 = vld [vmem:[%s1565_s1 + $0x8] sm:$0xff]  ;;  %v1326_v20 = vand.u32 4294901760, %v26_v30  ;;  %v1336_v38 = vsub.f32 %v27_v3, %v1301_v4 }
  0x31   :  { %439 = vmatpush.msrb.mxu2 %v1167_v51  ;;  %v1339_v59 = vand.u32 4294901760, %v1314_v5  ;;  %518 = vmatpush.msrb.mxu3 %v517_v37  ;;  %v535_v37 = vand.u32 4294901760, %v534_v49 }
  0x32   :  { %345 = vmatpush.msrb.mxu0 %v1601_v16  ;;  %394 = vmatpush.msrb.mxu1 %v921_v9  ;;  %v1602_v16 = vand.u32 4294901760, %v1014_v46  ;;  %v529_v19 = vand.u32 4294901760, %v528_v29  ;;  %v91_v47 = vsub.f32 %v1280_v48, %v90_v0  ;;  %v24_v46 = vld [vmem:[%s1564_s2] sm:$0xff]  ;;  %v1354_v29 = vsub.f32 %v26_v30, %v1326_v20 }
  0x33   :  { %441 = vmatpush.msrb.mxu2 %v1185_v33  ;;  %524 = vmatpush.msrb.mxu3 %v523_v41  ;;  %v1604_v9 = vand.u32 4294901760, %v1044_v58  ;;  %v97_v3 = vsub.f32 %v1314_v5, %v1339_v59  ;;  %v1365_v62 = vand.u32 4294901760, %v24_v46  ;;  %v1606_v58 = vand.u32 4294901760, %v1062_v1 }
  0x34   :  { %349 = vmatpush.msrb.mxu0 %v1602_v16  ;;  %396 = vmatpush.msrb.mxu1 %v923_v10  ;;  %v1603_v10 = vand.u32 4294901760, %v1029_v52  ;;  %v1350_v16 = vand.u32 4294901760, %v25_v40  ;;  %v1605_v52 = vand.u32 4294901760, %v1299_v21  ;;  %v92_v30 = vand.u32 4294901760, %v91_v47 }
  0x35   :  { %443 = vmatpush.msrb.mxu2 %v1203_v24  ;;  %530 = vmatpush.msrb.mxu3 %v529_v19  ;;  %v557_v1 = vand.u32 4294901760, %v1354_v29  ;;  %v1608_v47 = vand.u32 4294901760, %v1082_v26  ;;  %v98_v19 = vand.u32 4294901760, %v97_v3  ;;  %v1609_v26 = vand.u32 4294901760, %v1099_v39 }
  0x36   :  { %353 = vmatpush.msrb.mxu0 %v1603_v10  ;;  %398 = vmatpush.msrb.mxu1 %v925_v11  ;;  %v540_v11 = vsub.f32 %v1299_v21, %v1605_v52  ;;  %v551_v10 = vand.u32 4294901760, %v1336_v38  ;;  %v1375_v49 = vsub.f32 %v25_v40, %v1350_v16  ;;  %v1391_v52 = vsub.f32 %v24_v46, %v1365_v62 }
  0x37   :  { %445 = vmatpush.msrb.mxu2 %v1219_v22  ;;  %536 = vmatpush.msrb.mxu3 %v535_v37  ;;  %v558_v46 = vsub.f32 %v1354_v29, %v557_v1  ;;  %v1610_v39 = vand.u32 4294901760, %v1117_v53 }
  0x38   :  { %357 = vmatpush.msrb.mxu0 %v1604_v9  ;;  %400 = vmatpush.msrb.mxu1 %v944_v17  ;;  %v1607_v17 = vand.u32 4294901760, %v1320_v2  ;;  %v1380_v9 = vld [vmem:[%s1566_s0] sm:$0xff]  ;;  %v552_v40 = vsub.f32 %v1336_v38, %v551_v10  ;;  %v563_v37 = vand.u32 4294901760, %v1375_v49 }
  0x39   :  { %447 = vmatpush.msrb.mxu2 %v1237_v23  ;;  %93 = vmatmul.f32.vlgmr.msra.gmra.mxu0 %v92_v30  ;;  %v99_v30 = vsub.f32 %v97_v3, %v98_v19  ;;  %v559_v53 = vand.u32 4294901760, %v558_v46 }
  0x3a   :  { %361 = vmatpush.msrb.mxu0 %v1606_v58  ;;  %402 = vmatpush.msrb.mxu1 %v963_v25  ;;  %v546_v41 = vsub.f32 %v1320_v2, %v1607_v17  ;;  %v541_v25 = vand.u32 4294901760, %v540_v11  ;;  %v553_v11 = vand.u32 4294901760, %v552_v40  ;;  %v564_v58 = vsub.f32 %v1375_v49, %v563_v37 }
  0x3b   :  { %260 = vmatmul.f32.vlgmr.msra.gmra.mxu2 %v1280_v48  ;;  %v1395_v48 = vand.u32 4294901760, %v1380_v9  ;;  %304 = vmatmul.f32.vlgmr.msra.gmra.mxu3 %v90_v0  ;;  %v569_v0 = vand.u32 4294901760, %v1391_v52  ;;  %v1611_v17 = vand.u32 4294901760, %v1122_v54 }
  0x3c   :  { %365 = vmatpush.msrb.mxu0 %v1608_v47  ;;  %404 = vmatpush.msrb.mxu1 %v970_v28  ;;  %v547_v28 = vand.u32 4294901760, %v546_v41  ;;  %v1428_v47 = vld [vmem:[%s1566_s0 + $0x8] sm:$0xff] }
  0x3d   :  { %449 = vmatpush.msrb.mxu2 %v1271_v60  ;;  %542 = vmatpush.msrb.mxu3 %v541_v25  ;;  %v570_v41 = vsub.f32 %v1391_v52, %v569_v0  ;;  %v1436_v25 = vand.u32 4294901760, %v1428_v47 }
  0x3e   :  { %369 = vmatpush.msrb.mxu0 %v1609_v26  ;;  %406 = vmatpush.msrb.mxu1 %v988_v34  ;;  %v1412_v34 = vsub.f32 %v1380_v9, %v1395_v48 }
  0x3f   :  { %451 = vmatpush.msrb.mxu2 %v1288_v36  ;;  %202 = vmatmul.f32.vlgmr.msra.gmra.mxu1 %v1250_v61  ;;  %v571_v40 = vand.u32 4294901760, %v570_v41 }
  0x40   :  { %373 = vmatpush.msrb.mxu0 %v1610_v39  ;;  %408 = vmatpush.msrb.mxu1 %v1011_v45  ;;  %v100_v45 = vand.u32 4294901760, %v99_v30  ;;  %v462_v54 = vand.u32 4294901760, %v1412_v34 }
  0x41   :  { %453 = vmatpush.msrb.mxu2 %v1301_v4  ;;  %548 = vmatpush.msrb.mxu3 %v547_v28  ;;  %v1614_v28 = vand.u32 4294901760, %v1141_v6 }
  0x42   :  { %377 = vmatpush.msrb.mxu0 %v1611_v17  ;;  %410 = vmatpush.msrb.mxu1 %v1025_v50  ;;  %v565_v50 = vand.u32 4294901760, %v564_v58 }
  0x43   :  { %455 = vmatpush.msrb.mxu2 %v1326_v20  ;;  %554 = vmatpush.msrb.mxu3 %v553_v11 }
  0x44   :  { %584 = vmatpush.msra.mxu0 %v1104_v42  ;;  %265 = vmatmul.f32.gmra.mxu2 %v97_v3  ;;  %v1612_v3 = vand.u32 4294901760, %v1104_v42 }
  0x45   :  { %412 = vmatpush.msrb.mxu1 %v1040_v56  ;;  %457 = vmatpush.msrb.mxu2 %v1350_v16  ;;  %v463_v56 = vsub.f32 %v1412_v34, %v462_v54 }
  0x46   :  { %560 = vmatpush.msrb.mxu3 %v559_v53  ;;  %587 = vmatpush.msra.mxu0 %v1125_v55  ;;  %v858_v53 = vld [vmem:[%s1567_s4] ss:$0 sm:$0xff] }
  0x47   :  { %101 = vmatmul.f32.gmra.mxu0 %v100_v45  ;;  %310 = vmatmul.f32.gmra.mxu3 %v98_v19  ;;  %v1449_v19 = vsub.f32 %v1428_v47, %v1436_v25  ;;  %v464_v26 = vand.u32 4294901760, %v463_v56 }
  0x48   :  { %414 = vmatpush.msrb.mxu1 %v1058_v63  ;;  %459 = vmatpush.msrb.mxu2 %v1365_v62  ;;  %v1613_v63 = vand.u32 4294901760, %v1125_v55 }
  0x49   :  { %566 = vmatpush.msrb.mxu3 %v565_v50  ;;  %590 = vmatpush.msra.mxu0 %v1141_v6  ;;  %v470_v42 = vand.u32 4294901760, %v1449_v19 }
  0x4a   :  { %689 = vmatpush.msra.mxu2 %v1612_v3  ;;  %206 = vmatmul.f32.gmra.mxu1 %v1339_v59 }
  0x4b   :  { %416 = vmatpush.msrb.mxu1 %v1078_v13  ;;  %572 = vmatpush.msrb.mxu3 %v571_v40  ;;  %v1615_v13 = vand.u32 4294901760, %v1165_v57 }
  0x4c   :  { %593 = vmatpush.msra.mxu0 %v1165_v57  ;;  %693 = vmatpush.msra.mxu2 %v1613_v63 }
  0x4d   :  { %760 = vmatpush.msra.mxu3 %v1072_v8  ;;  %418 = vmatpush.msrb.mxu1 %v1089_v31  ;;  %v1616_v31 = vand.u32 4294901760, %v1183_v35 }
  0x4e   :  { %596 = vmatpush.msra.mxu0 %v1183_v35  ;;  %697 = vmatpush.msra.mxu2 %v1614_v28  ;;  %v1618_v35 = vand.u32 4294901760, %v1217_v14 }
  0x4f   :  { %642 = vmatpush.msra.mxu1 %v1072_v8  ;;  %762 = vmatpush.msra.mxu3 %v1091_v32  ;;  %v471_v8 = vsub.f32 %v1449_v19, %v470_v42 }
  0x50   :  { %465 = vmatmul.f32.vlgmr.msrb.gmra.mxu2 %v464_v26  ;;  %599 = vmatpush.msra.mxu0 %v1201_v27 }
  0x51   :  { %644 = vmatpush.msra.mxu1 %v1091_v32  ;;  %701 = vmatpush.msra.mxu2 %v1615_v13  ;;  %v472_v57 = vand.u32 4294901760, %v471_v8  ;;  %v1617_v32 = vand.u32 4294901760, %v1201_v27  ;;  %v1620_v27 = vand.u32 4294901760, %v1247_v44 }
  0x52   :  { %764 = vmatpush.msra.mxu3 %v1106_v43  ;;  %379 = vmatmul.f32.vlgmr.msrb.gmra.mxu0 %v1250_v61 }
  0x53   :  { %574 = vmatmul.f32.vlgmr.msrb.gmra.mxu3 %v1395_v48  ;;  %602 = vmatpush.msra.mxu0 %v1217_v14 }
  0x54   :  { %646 = vmatpush.msra.mxu1 %v1106_v43  ;;  %705 = vmatpush.msra.mxu2 %v1616_v31  ;;  %v1619_v43 = vand.u32 4294901760, %v1235_v15 }
  0x55   :  { %766 = vmatpush.msra.mxu3 %v1135_v7  ;;  %420 = vmatmul.f32.vlgmr.msrb.gmra.mxu1 %v1250_v61 }
  0x56   :  { %605 = vmatpush.msra.mxu0 %v1235_v15  ;;  %648 = vmatpush.msra.mxu1 %v1135_v7 }
  0x57   :  { %709 = vmatpush.msra.mxu2 %v1617_v32  ;;  %768 = vmatpush.msra.mxu3 %v1151_v18 }
  0x58   :  { %608 = vmatpush.msra.mxu0 %v1247_v44  ;;  %650 = vmatpush.msra.mxu1 %v1151_v18 }
  0x59   :  { %713 = vmatpush.msra.mxu2 %v1618_v35  ;;  %770 = vmatpush.msra.mxu3 %v1167_v51 }
  0x5a   :  { %473 = vmatmul.f32.gmra.mxu2 %v472_v57  ;;  %611 = vmatpush.msra.mxu0 %v1263_v12 }
  0x5b   :  { %652 = vmatpush.msra.mxu1 %v1167_v51  ;;  %717 = vmatpush.msra.mxu2 %v1619_v43  ;;  %v1621_v51 = vand.u32 4294901760, %v1263_v12 }
  0x5c   :  { %772 = vmatpush.msra.mxu3 %v1185_v33  ;;  %383 = vmatmul.f32.gmra.mxu0 %v1339_v59 }
  0x5d   :  { %578 = vmatmul.f32.gmra.mxu3 %v1436_v25  ;;  %614 = vmatpush.msra.mxu0 %v1299_v21 }
  0x5e   :  { %654 = vmatpush.msra.mxu1 %v1185_v33  ;;  %721 = vmatpush.msra.mxu2 %v1620_v27  ;;  %v1622_v33 = vand.u32 4294901760, %v1299_v21 }
  0x5f   :  { %774 = vmatpush.msra.mxu3 %v1203_v24  ;;  %424 = vmatmul.f32.gmra.mxu1 %v1339_v59 }
  0x60   :  { %617 = vmatpush.msra.mxu0 %v1320_v2  ;;  %656 = vmatpush.msra.mxu1 %v1203_v24  ;;  %v1623_v24 = vand.u32 4294901760, %v1320_v2 }
  0x61   :  { %725 = vmatpush.msra.mxu2 %v1621_v51  ;;  %776 = vmatpush.msra.mxu3 %v1219_v22 }
  0x62   :  { %620 = vmatpush.msra.mxu0 %v1336_v38  ;;  %658 = vmatpush.msra.mxu1 %v1219_v22 }
  0x63   :  { %729 = vmatpush.msra.mxu2 %v1622_v33  ;;  %778 = vmatpush.msra.mxu3 %v1237_v23 }
  0x64   :  { %623 = vmatpush.msra.mxu0 %v1354_v29  ;;  %660 = vmatpush.msra.mxu1 %v1237_v23 }
  0x65   :  { %733 = vmatpush.msra.mxu2 %v1623_v24  ;;  %780 = vmatpush.msra.mxu3 %v1271_v60 }
  0x66   :  { %626 = vmatpush.msra.mxu0 %v1375_v49  ;;  %662 = vmatpush.msra.mxu1 %v1271_v60 }
  0x67   :  { %737 = vmatpush.msra.mxu2 %v551_v10  ;;  %782 = vmatpush.msra.mxu3 %v1288_v36 }
  0x68   :  { %629 = vmatpush.msra.mxu0 %v1391_v52  ;;  %664 = vmatpush.msra.mxu1 %v1288_v36 }
  0x69   :  { %741 = vmatpush.msra.mxu2 %v557_v1  ;;  %784 = vmatpush.msra.mxu3 %v1301_v4 }
  0x6a   :  { %632 = vmatmul.f32.vlgmr.msra.gmra.mxu0 %v1412_v34  ;;  %666 = vmatpush.msra.mxu1 %v1301_v4 }
  0x6b   :  { %745 = vmatpush.msra.mxu2 %v563_v37  ;;  %786 = vmatpush.msra.mxu3 %v1326_v20 }
  0x6c   :  { %668 = vmatpush.msra.mxu1 %v1326_v20 }
  0x6d   :  { %749 = vmatpush.msra.mxu2 %v569_v0  ;;  %788 = vmatpush.msra.mxu3 %v1350_v16 }
  0x6e   :  { %751 = vmatmul.f32.vlgmr.msra.gmra.mxu2 %v1395_v48  ;;  %670 = vmatpush.msra.mxu1 %v1350_v16 }
  0x6f   :  { %790 = vmatpush.msra.mxu3 %v1365_v62 }
  0x70   :  { %792 = vmatmul.f32.vlgmr.msra.gmra.mxu3 %v1395_v48  ;;  %672 = vmatpush.msra.mxu1 %v1365_v62 }
  0x71   :  { %676 = vmatmul.f32.vlgmr.msra.gmra.mxu1 %v462_v54 }
  0x72   :  { %637 = vmatmul.f32.gmra.mxu0 %v1449_v19 }
  0x76   :  { %755 = vmatmul.f32.gmra.mxu2 %v1436_v25 }
  0x78   :  { %796 = vmatmul.f32.gmra.mxu3 %v1436_v25 }
  0x79   :  { %682 = vmatmul.f32.gmra.mxu1 %v470_v42 }
  0xb6   :  { %v94_v18 = vpop.f32.mrf.mxu0 }
  0xbc   :  { %v203_v55 = vpop.f32.mrf.mxu1 }
  0xbd   :  { %v204_v22 = vadd.f32 %v203_v55, %v94_v18  ;;  %v1624_v18 = vld [vmem:[#allocation2_spill] sm:$0xff] }
  0xbe   :  { %v261_v7 = vpop.f32.mrf.mxu2  ;;  %v305_v12 = vpop.f32.mrf.mxu3  ;;  %v844_v55 = vsub.f32 %v1380_v9, %v1624_v18  ;;  %v845_v9 = vsub.f32 %v1428_v47, %v1314_v5 }
  0xbf   :  { %v262_v15 = vadd.f32 %v261_v7, %v204_v22 }
  0xc1   :  { %v306_v61 = vadd.f32 %v305_v12, %v262_v15 }
  0xc4   :  { %v102_v6 = vpop.f32.mrf.mxu0 }
  0xc7   :  { %v207_v14 = vpop.f32.mrf.mxu1  ;;  %v266_v62 = vpop.f32.mrf.mxu2 }
  0xc8   :  { %v208_v2 = vadd.f32 %v207_v14, %v102_v6 }
  0xca   :  { %v311_v23 = vpop.f32.mrf.mxu3  ;;  %v267_v36 = vadd.f32 %v266_v62, %v208_v2 }
  0xcc   :  { %v312_v59 = vadd.f32 %v311_v23, %v267_v36 }
  0xcf   :  { %v380_v44 = vpop.f32.mrf.mxu0 }
  0xd0   :  { %v381_v21 = vadd.f32 %v380_v44, %v306_v61 }
  0xd2   :  { %v421_v60 = vpop.f32.mrf.mxu1 }
  0xd3   :  { %v466_v4 = vpop.f32.mrf.mxu2  ;;  %v422_v16 = vadd.f32 %v421_v60, %v381_v21 }
  0xd5   :  { %v467_v10 = vadd.f32 %v466_v4, %v422_v16 }
  0xd6   :  { %v575_v38 = vpop.f32.mrf.mxu3 }
  0xd7   :  { %v576_v48 = vadd.f32 %v575_v38, %v467_v10 }
  0xd9   :  { %v384_v20 = vpop.f32.mrf.mxu0 }
  0xda   :  { %v385_v49 = vadd.f32 %v384_v20, %v312_v59 }
  0xdc   :  { %v425_v29 = vpop.f32.mrf.mxu1 }
  0xdd   :  { %v474_v52 = vpop.f32.mrf.mxu2  ;;  %v426_v37 = vadd.f32 %v425_v29, %v385_v49 }
  0xdf   :  { %v475_v0 = vadd.f32 %v474_v52, %v426_v37 }
  0xe0   :  { %v579_v46 = vpop.f32.mrf.mxu3 }
  0xe1   :  { %v580_v45 = vadd.f32 %v579_v46, %v475_v0 }
  0xe7   :  { %v633_v1 = vpop.f32.mrf.mxu0 }
  0xe8   :  { %v634_v11 = vadd.f32 %v633_v1, %v576_v48 }
  0xee   :  { %v677_v30 = vpop.f32.mrf.mxu1 }
  0xef   :  { %v678_v39 = vadd.f32 %v677_v30, %v634_v11  ;;  %v638_v58 = vpop.f32.mrf.mxu0 }
  0xf0   :  { %v639_v50 = vadd.f32 %v638_v58, %v580_v45 }
  0xf1   :  { %v752_v34 = vpop.f32.mrf.mxu2 }
  0xf2   :  { %v753_v17 = vadd.f32 %v752_v34, %v678_v39 }
  0xf3   :  { %v793_v41 = vpop.f32.mrf.mxu3 }
  0xf4   :  { %v794_v54 = vadd.f32 %v793_v41, %v753_v17 }
  0xf6   :  { %v804_v25 = vadd.f32 %v858_v53, %v794_v54  ;;  %v683_v40 = vpop.f32.mrf.mxu1 }
  0xf7   :  { %v684_v56 = vadd.f32 %v683_v40, %v639_v50 }
  0xf8   :  { %v856_v3 = vmul.f32 -1.442695, %v804_v25 }
  0xf9   :  { %v756_v19 = vpop.f32.mrf.mxu2 }
  0xfa   :  { %859 = vpow2.f32 %v856_v3  ;;  %v757_v63 = vadd.f32 %v756_v19, %v684_v56 }
  0xfb   :  { %v797_v26 = vpop.f32.mrf.mxu3 }
  0xfc   :  { %v798_v42 = vadd.f32 %v797_v26, %v757_v63 }
  0xfe   :  { %v805_v28 = vadd.f32 %v858_v53, %v798_v42 }
 0x100   :  { %v860_v13 = vpop.eup %859  ;;  %v857_v8 = vmul.f32 -1.442695, %v805_v28 }
 0x101   :  { %v812_v31 = vadd.f32 1.0, %v860_v13 }
 0x102   :  { %861 = vpow2.f32 %v857_v8 }
 0x103   :  { %863 = vrcp.f32 %v812_v31  ;;  %v825_v51 = vand.u32 2147483648, %v812_v31  ;;  %v823_v24 = vand.u32 2147483647, %v812_v31  ;;  %vm819_vm1 = vweird.f32 %v812_v31 }
 0x105   :  { %v826_v12 = vor.u32 1.1754944e-38, %v825_v51  ;;  %vm824_vm3 = vcmp.eq.f32.partialorder %v823_v24, 8.507059e+37 }
 0x108   :  { %v862_v57 = vpop.eup %861 }
 0x109   :  { %v864_v32 = vpop.eup %863  ;;  %v813_v35 = vadd.f32 1.0, %v862_v57 }
 0x10a   :  { %v815_v43 = vmul.f32 %v864_v32, %v812_v31  ;;  %vm820_vm0 = vweird.f32 %v864_v32 }
 0x10b   :  { %865 = vrcp.f32 %v813_v35  ;;  %vm821_vm2 = vmor %vm819_vm1, %vm820_vm0  ;;  %v840_v23 = vand.u32 2147483648, %v813_v35  ;;  %v838_v60 = vand.u32 2147483647, %v813_v35  ;;  %vm834_vm5 = vweird.f32 %v813_v35 }
 0x10c   :  { %v816_v27 = vsub.f32 1.0, %v815_v43 }
 0x10d   :  { %v841_v21 = vor.u32 1.1754944e-38, %v840_v23  ;;  %vm839_vm7 = vcmp.eq.f32.partialorder %v838_v60, 8.507059e+37 }
 0x10e   :  { %v817_v33 = vmul.f32 %v864_v32, %v816_v27 }
 0x110   :  { %v818_v7 = vadd.f32 %v864_v32, %v817_v33 }
 0x111   :  { %v866_v6 = vpop.eup %865 }
 0x112   :  { %v822_v14 = vsel %vm821_vm2, %v864_v32, %v818_v7  ;;  %v830_v22 = vmul.f32 %v866_v6, %v813_v35  ;;  %vm835_vm4 = vweird.f32 %v866_v6 }
 0x113   :  { %v827_v62 = vsel %vm824_vm3, %v826_v12, %v822_v14  ;;  %vm836_vm6 = vmor %vm834_vm5, %vm835_vm4 }
 0x114   :  { %v846_v44 = vmul.f32 %v844_v55, %v827_v62  ;;  %v831_v15 = vsub.f32 1.0, %v830_v22 }
 0x116   :  { %v848_v61 = vadd.f32 %v846_v44, %v1624_v18  ;;  %v832_v2 = vmul.f32 %v866_v6, %v831_v15 }
 0x118   :  { %850 = vst [vmem:[%s1568_s5] sm:$0xff] %v848_v61  ;;  %v833_v36 = vadd.f32 %v866_v6, %v832_v2 }
 0x11a   :  { %v837_v4 = vsel %vm836_vm6, %v866_v6, %v833_v36 }
 0x11b   :  { %v842_v20 = vsel %vm839_vm7, %v841_v21, %v837_v4 }
 0x11c   :  { %v847_v38 = vmul.f32 %v845_v9, %v842_v20 }
 0x11e   :  { %v849_v59 = vadd.f32 %v847_v38, %v1314_v5 }
 0x120   :  { %851 = vst [vmem:[%s1568_s5 + $0x8] sm:$0xff] %v849_v59 }

</bundles_post_ra>
